<compile_context>
chip_gen: v7x
topology: tpu7x:2x2x1
jax: 0.10.0
libtpu: 0.0.40
codegen_flags: <defaults>
</compile_context>

<pallas_src>
import functools

import jax
import jax.numpy as jnp
from jax.experimental import pallas as pl
from jax.experimental.pallas import tpu as pltpu

_MEL_TILE_BYTES = 4 * 1024 * 1024   # per-tensor streaming tile (x3 tensors x2 bufs ~ 24 MiB)
_VMEM_LIMIT = 40 * 1024 * 1024      # < 64 MiB (v7x physical), << 128 MiB (v5e/v6e)


def _round_up(x, m):
    return ((x + m - 1) // m) * m


def _accumulate_mel(mel_out_ref, mel_post_ref, mel_tgt_ref, acc_ref,
                    valid_rows=None):
    """Adds this tile's sum(d1^2 + d2^2), folded to (8, T), into the VMEM acc."""
    tgt = mel_tgt_ref[...].astype(jnp.float32)
    d1 = mel_out_ref[...].astype(jnp.float32) - tgt
    d2 = mel_post_ref[...].astype(jnp.float32) - tgt
    sq = d1 * d1 + d2 * d2                       # merged MSE accumulator
    if valid_rows is not None:
        # Only the final partial tile pays for the mask (select is NaN-safe
        # w.r.t. the unspecified out-of-bounds rows of the block).
        row = jax.lax.broadcasted_iota(jnp.int32, (sq.shape[0], 1), 0)
        sq = jnp.where(row < valid_rows, sq, jnp.float32(0.0))
    r, c = sq.shape
    # Pure-VPU fold across vreg row-groups; the XLU reduce happens in finalize.
    partial = sq.reshape(r // 8, 8, c).sum(axis=0)
    acc_ref[...] += partial


def _tacotron2_loss_kernel(mel_out_ref, mel_post_ref, mel_tgt_ref,
                           gate_out_ref, gate_tgt_ref,
                           out_ref, acc_ref, *, n_mel, n_gate, rem_rows):
    i = pl.program_id(0)
    last = pl.num_programs(0) - 1

    @pl.when(i == 0)
    def _init():
        acc_ref[...] = jnp.zeros_like(acc_ref)

    if rem_rows is None:
        # Every tile is full: no masking anywhere.
        _accumulate_mel(mel_out_ref, mel_post_ref, mel_tgt_ref, acc_ref)
    else:
        @pl.when(i < last)
        def _full_tile():
            _accumulate_mel(mel_out_ref, mel_post_ref, mel_tgt_ref, acc_ref)

        @pl.when(i == last)
        def _partial_tile():
            _accumulate_mel(mel_out_ref, mel_post_ref, mel_tgt_ref, acc_ref,
                            valid_rows=rem_rows)

    @pl.when(i == last)
    def _finalize():
        # Gate BCE-with-logits (stable form), exact shapes -> no mask needed.
        # Gate blocks are resident (constant index map), so this reads VMEM.
        x = gate_out_ref[...].astype(jnp.float32)
        z = gate_tgt_ref[...].astype(jnp.float32)
        bce = jnp.maximum(x, 0.0) - x * z + jnp.log1p(jnp.exp(-jnp.abs(x)))
        gate_sum = jnp.sum(bce)
        mel_sum = jnp.sum(acc_ref[...])          # single XLU reduce, once
        out_ref[0, 0] = (mel_sum * jnp.float32(1.0 / n_mel)
                         + gate_sum * jnp.float32(1.0 / n_gate))


def tacotron2_loss(mel_out, mel_out_postnet, gate_out, mel_target, gate_target,
                   mel_tile_bytes=_MEL_TILE_BYTES):
    """model_output = (mel_out, mel_out_postnet, gate_out, _),
       targets      = (mel_target, gate_target).  Returns a scalar f32 loss."""
    n_mel = int(mel_out.size)        # B * n_mel_channels * T
    n_gate = int(gate_out.size)      # B * T   (matches torch .view(-1, 1))

    # ---- mel tensors: free reshape only (no padded HBM copies) --------------
    T = int(mel_out.shape[-1])

    def flat_mel(x):
        return x.reshape(-1, T)      # collapse leading dims: bitcast reshape

    mo = flat_mel(mel_out)
    mp = flat_mel(mel_out_postnet)
    mt = flat_mel(mel_target)
    rows = int(mo.shape[0])

    # ---- gate tensors: natural 2-D shape, resident block, no pad / no mask --
    if gate_out.ndim == 1:
        go = gate_out.reshape(1, -1)
    else:
        go = gate_out.reshape(gate_out.shape[0], -1)
    gt = gate_target.reshape(go.shape)

    # ---- row-tile sizing: byte budget (bf16 streams 2x rows automatically) --
    itemsize = jnp.dtype(mel_out.dtype).itemsize
    budget_rows = max(8, (mel_tile_bytes // max(1, T * itemsize)) // 8 * 8)
    full_groups = (rows // 8) * 8
    if full_groups >= 8:
        tile_rows = min(budget_rows, full_groups)   # multiple of 8, <= rows
    else:
        tile_rows = 8                                # degenerate tiny input
    num_tiles = pl.cdiv(rows, tile_rows)
    rem = rows - (num_tiles - 1) * tile_rows
    rem_rows = None if rem == tile_rows else rem     # static: mask last tile?

    mel_spec = pl.BlockSpec((tile_rows, T), lambda i: (i, 0))
    gate_spec = pl.BlockSpec(tuple(int(d) for d in go.shape), lambda i: (0, 0))

    mel_itemsize = itemsize
    gate_itemsize = jnp.dtype(gate_out.dtype).itemsize
    cost = pl.CostEstimate(
        flops=7 * n_mel + 6 * n_gate,
        transcendentals=2 * n_gate,
        bytes_accessed=3 * n_mel * mel_itemsize + 2 * n_gate * gate_itemsize + 4,
    )

    kernel = functools.partial(_tacotron2_loss_kernel,
                               n_mel=n_mel, n_gate=n_gate, rem_rows=rem_rows)

    out = pl.pallas_call(
        kernel,
        out_shape=jax.ShapeDtypeStruct((1, 1), jnp.float32),
        grid=(num_tiles,),
        in_specs=[mel_spec, mel_spec, mel_spec, gate_spec, gate_spec],
        out_specs=pl.BlockSpec(memory_space=pltpu.MemorySpace.SMEM),
        scratch_shapes=[pltpu.VMEM((8, T), jnp.float32)],   # vector accumulator
        compiler_params=pltpu.CompilerParams(
            dimension_semantics=("arbitrary",),              # carried accumulator
            vmem_limit_bytes=_VMEM_LIMIT,
        ),
        cost_estimate=cost,
    )(mo, mp, mt, go, gt)
    return out[0, 0]


def _reference_loss(mel_out, mel_out_postnet, gate_out, mel_target, gate_target):
    """Pure-JAX reference (f32 math), mirrors the PyTorch module."""
    f32 = jnp.float32
    mel_loss = (jnp.mean((mel_out.astype(f32) - mel_target.astype(f32)) ** 2)
                + jnp.mean((mel_out_postnet.astype(f32) - mel_target.astype(f32)) ** 2))
    x = gate_out.astype(f32).reshape(-1, 1)
    z = gate_target.astype(f32).reshape(-1, 1)
    gate_loss = jnp.mean(jnp.maximum(x, 0) - x * z + jnp.log1p(jnp.exp(-jnp.abs(x))))
    return mel_loss + gate_loss


if __name__ == "__main__":
    key = jax.random.PRNGKey(0)
    k1, k2, k3, k4, k5 = jax.random.split(key, 5)

    # --- Case 1: small f32, single full tile --------------------------------
    B, M, T = 2, 8, 16   # batch, mel channels, frames
    mel_out = jax.random.normal(k1, (B, M, T), dtype=jnp.float32)
    mel_out_postnet = jax.random.normal(k2, (B, M, T), dtype=jnp.float32)
    mel_target = jax.random.normal(k3, (B, M, T), dtype=jnp.float32)
    gate_out = jax.random.normal(k4, (B, T), dtype=jnp.float32)
    gate_target = (jax.random.uniform(k5, (B, T)) > 0.5).astype(jnp.float32)

    loss = tacotron2_loss(mel_out, mel_out_postnet, gate_out,
                          mel_target, gate_target)
    jax.block_until_ready(loss)
    ref = _reference_loss(mel_out, mel_out_postnet, gate_out,
                          mel_target, gate_target)
    assert jnp.allclose(loss, ref, rtol=1e-5, atol=1e-5), (loss, ref)

    # --- Case 2: multi-tile streaming with a partial (masked) last tile -----
    B2, M2, T2 = 3, 10, 24            # rows = 30 -> tiles of 8 rows + remainder 6
    kk = jax.random.split(jax.random.PRNGKey(1), 5)
    a = jax.random.normal(kk[0], (B2, M2, T2), dtype=jnp.float32)
    b = jax.random.normal(kk[1], (B2, M2, T2), dtype=jnp.float32)
    c = jax.random.normal(kk[2], (B2, M2, T2), dtype=jnp.float32)
    g = jax.random.normal(kk[3], (B2, T2), dtype=jnp.float32)
    gz = (jax.random.uniform(kk[4], (B2, T2)) > 0.5).astype(jnp.float32)

    loss2 = tacotron2_loss(a, b, g, c, gz, mel_tile_bytes=8 * T2 * 4)  # tiny tiles
    jax.block_until_ready(loss2)
    ref2 = _reference_loss(a, b, g, c, gz)
    assert jnp.allclose(loss2, ref2, rtol=1e-5, atol=1e-5), (loss2, ref2)

    # --- Case 3: bf16 streaming path (native dtype in HBM, f32 in-kernel) ---
    bf = jnp.bfloat16
    loss3 = tacotron2_loss(a.astype(bf), b.astype(bf), g.astype(bf),
                           c.astype(bf), gz.astype(bf))
    jax.block_until_ready(loss3)
    ref3 = _reference_loss(a.astype(bf), b.astype(bf), g.astype(bf),
                           c.astype(bf), gz.astype(bf))
    assert jnp.allclose(loss3, ref3, rtol=1e-3, atol=1e-3), (loss3, ref3)

    print("KERNEL_OK")
</pallas_src>

<mosaic_0001>
module attributes {stable_mosaic.version = 11 : i64} {
  func.func @_tacotron2_loss_kernel(%arg0: i32, %arg1: memref<16x16xf32, #tpu.memory_space<vmem>>, %arg2: memref<16x16xf32, #tpu.memory_space<vmem>>, %arg3: memref<16x16xf32, #tpu.memory_space<vmem>>, %arg4: memref<2x16xf32, #tpu.memory_space<vmem>>, %arg5: memref<2x16xf32, #tpu.memory_space<vmem>>, %arg6: memref<1x1xf32, #tpu.memory_space<smem>>, %arg7: memref<8x16xf32, #tpu.memory_space<vmem>>) attributes {dimension_semantics = [#tpu.dimension_semantics<arbitrary>], iteration_bounds = array<i64: 1>, scalar_prefetch = 0 : i64, scratch_operands = 1 : i64, tpu.core_type = #tpu.core_type<tc>, window_params = [{transform_indices = @transform_0, window_bounds = array<i64: 16, 16>}, {transform_indices = @transform_1, window_bounds = array<i64: 16, 16>}, {transform_indices = @transform_2, window_bounds = array<i64: 16, 16>}, {pipeline_mode = #tpu.pipeline_mode<synchronous>, transform_indices = @transform_3, window_bounds = array<i64: 2, 16>}, {pipeline_mode = #tpu.pipeline_mode<synchronous>, transform_indices = @transform_4, window_bounds = array<i64: 2, 16>}, {transform_indices = @transform_5, window_bounds = array<i64: 1, 1>}]} {
    %c0_i32 = arith.constant 0 : i32
    %0 = arith.cmpi eq, %arg0, %c0_i32 : i32
    %1 = arith.extui %0 : i1 to i32
    %c0_i32_0 = arith.constant 0 : i32
    %2 = arith.cmpi ne, %1, %c0_i32_0 : i32
    scf.if %2 {
      %cst_12 = arith.constant 0.000000e+00 : f32
      %19 = vector.broadcast %cst_12 : f32 to vector<8x16xf32>
      %c0_13 = arith.constant 0 : index
      %c0_14 = arith.constant 0 : index
      %20 = vector.load %arg7[%c0_13, %c0_14] : memref<8x16xf32, #tpu.memory_space<vmem>>, vector<8x16xf32>
      tpu.vector_store %arg7[%c0_13, %c0_14], %19 {strides = array<i32>} : memref<8x16xf32, #tpu.memory_space<vmem>>, vector<8x16xf32>,
    } else {
    }
    %c0 = arith.constant 0 : index
    %c0_1 = arith.constant 0 : index
    %3 = vector.load %arg3[%c0, %c0_1] : memref<16x16xf32, #tpu.memory_space<vmem>>, vector<16x16xf32>
    %c0_2 = arith.constant 0 : index
    %c0_3 = arith.constant 0 : index
    %4 = vector.load %arg1[%c0_2, %c0_3] : memref<16x16xf32, #tpu.memory_space<vmem>>, vector<16x16xf32>
    %5 = arith.subf %4, %3 : vector<16x16xf32>
    %c0_4 = arith.constant 0 : index
    %c0_5 = arith.constant 0 : index
    %6 = vector.load %arg2[%c0_4, %c0_5] : memref<16x16xf32, #tpu.memory_space<vmem>>, vector<16x16xf32>
    %7 = arith.subf %6, %3 : vector<16x16xf32>
    %8 = arith.mulf %5, %5 : vector<16x16xf32>
    %9 = arith.mulf %7, %7 : vector<16x16xf32>
    %10 = arith.addf %8, %9 : vector<16x16xf32>
    %11 = vector.shape_cast %10 : vector<16x16xf32> to vector<2x8x16xf32>
    %cst = arith.constant dense<0.000000e+00> : vector<8x16xf32>
    %12 = vector.multi_reduction <add>, %11, %cst [0] : vector<2x8x16xf32> to vector<8x16xf32>
    %c0_6 = arith.constant 0 : index
    %c0_7 = arith.constant 0 : index
    %13 = vector.load %arg7[%c0_6, %c0_7] : memref<8x16xf32, #tpu.memory_space<vmem>>, vector<8x16xf32>
    %14 = arith.addf %13, %12 : vector<8x16xf32>
    %c0_8 = arith.constant 0 : index
    %c0_9 = arith.constant 0 : index
    %15 = vector.load %arg7[%c0_8, %c0_9] : memref<8x16xf32, #tpu.memory_space<vmem>>, vector<8x16xf32>
    tpu.vector_store %arg7[%c0_8, %c0_9], %14 {strides = array<i32>} : memref<8x16xf32, #tpu.memory_space<vmem>>, vector<8x16xf32>,
    %c0_i32_10 = arith.constant 0 : i32
    %16 = arith.cmpi eq, %arg0, %c0_i32_10 : i32
    %17 = arith.extui %16 : i1 to i32
    %c0_i32_11 = arith.constant 0 : i32
    %18 = arith.cmpi ne, %17, %c0_i32_11 : i32
    scf.if %18 {
      %c0_12 = arith.constant 0 : index
      %c0_13 = arith.constant 0 : index
      %19 = vector.load %arg4[%c0_12, %c0_13] : memref<2x16xf32, #tpu.memory_space<vmem>>, vector<2x16xf32>
      %c0_14 = arith.constant 0 : index
      %c0_15 = arith.constant 0 : index
      %20 = vector.load %arg5[%c0_14, %c0_15] : memref<2x16xf32, #tpu.memory_space<vmem>>, vector<2x16xf32>
      %cst_16 = arith.constant 0.000000e+00 : f32
      %21 = vector.broadcast %cst_16 : f32 to vector<2x16xf32>
      %22 = arith.maximumf %19, %21 : vector<2x16xf32>
      %23 = arith.mulf %19, %20 : vector<2x16xf32>
      %24 = arith.subf %22, %23 : vector<2x16xf32>
      %25 = math.absf %19 : vector<2x16xf32>
      %cst_17 = arith.constant 0.000000e+00 : f32
      %26 = vector.broadcast %cst_17 : f32 to vector<2x16xf32>
      %27 = arith.subf %26, %25 : vector<2x16xf32>
      %28 = math.exp %27 : vector<2x16xf32>
      %29 = math.log1p %28 : vector<2x16xf32>
      %30 = arith.addf %24, %29 : vector<2x16xf32>
      %31 = vector.shape_cast %30 : vector<2x16xf32> to vector<1x2x16xf32>
      %cst_18 = arith.constant dense<0.000000e+00> : vector<1xf32>
      %32 = vector.multi_reduction <add>, %31, %cst_18 [1, 2] : vector<1x2x16xf32> to vector<1xf32>
      %33 = vector.shape_cast %32 : vector<1xf32> to vector<1x1x1xf32>
      %34 = vector.extract %33[0, 0, 0] : f32 from vector<1x1x1xf32>
      %c0_19 = arith.constant 0 : index
      %c0_20 = arith.constant 0 : index
      %35 = vector.load %arg7[%c0_19, %c0_20] : memref<8x16xf32, #tpu.memory_space<vmem>>, vector<8x16xf32>
      %36 = vector.shape_cast %35 : vector<8x16xf32> to vector<1x8x16xf32>
      %cst_21 = arith.constant dense<0.000000e+00> : vector<1xf32>
      %37 = vector.multi_reduction <add>, %36, %cst_21 [1, 2] : vector<1x8x16xf32> to vector<1xf32>
      %38 = vector.shape_cast %37 : vector<1xf32> to vector<1x1x1xf32>
      %39 = vector.extract %38[0, 0, 0] : f32 from vector<1x1x1xf32>
      %cst_22 = arith.constant 3.906250e-03 : f32
      %40 = arith.mulf %39, %cst_22 : f32
      %cst_23 = arith.constant 3.125000e-02 : f32
      %41 = arith.mulf %34, %cst_23 : f32
      %42 = arith.addf %40, %41 : f32
      %c0_24 = arith.constant 0 : index
      %c0_25 = arith.constant 0 : index
      %43 = memref.load %arg6[%c0_24, %c0_25] : memref<1x1xf32, #tpu.memory_space<smem>>
      memref.store %42, %arg6[%c0_24, %c0_25] : memref<1x1xf32, #tpu.memory_space<smem>>
    } else {
    }
    return
  }
  func.func @transform_0(%arg0: i32) -> (i32, i32) {
    %c0_i32 = arith.constant 0 : i32
    %c0_i32_0 = arith.constant 0 : i32
    return %arg0, %c0_i32 : i32, i32
  }
  func.func @transform_1(%arg0: i32) -> (i32, i32) {
    %c0_i32 = arith.constant 0 : i32
    %c0_i32_0 = arith.constant 0 : i32
    return %arg0, %c0_i32 : i32, i32
  }
  func.func @transform_2(%arg0: i32) -> (i32, i32) {
    %c0_i32 = arith.constant 0 : i32
    %c0_i32_0 = arith.constant 0 : i32
    return %arg0, %c0_i32 : i32, i32
  }
  func.func @transform_3(%arg0: i32) -> (i32, i32) {
    %c0_i32 = arith.constant 0 : i32
    %c0_i32_0 = arith.constant 0 : i32
    %c0_i32_1 = arith.constant 0 : i32
    return %c0_i32, %c0_i32_0 : i32, i32
  }
  func.func @transform_4(%arg0: i32) -> (i32, i32) {
    %c0_i32 = arith.constant 0 : i32
    %c0_i32_0 = arith.constant 0 : i32
    %c0_i32_1 = arith.constant 0 : i32
    return %c0_i32, %c0_i32_0 : i32, i32
  }
  func.func @transform_5(%arg0: i32) -> (i32, i32) {
    %c0_i32 = arith.constant 0 : i32
    %c0_i32_0 = arith.constant 0 : i32
    %c0_i32_1 = arith.constant 0 : i32
    return %c0_i32, %c0_i32_0 : i32, i32
  }
}

</mosaic_0001>

<bundles_post_ra>
// kernel: tpu_custom_call.1
= control target key start
LH: loop header
LB: loop body
LE: loop exit
PB: predicated region body
PF: predicated region fallthrough
CT: control target
= control target key end

     0   :  { %10 = vsyncpa [#allocation4], 0  ;;  %s364_s0 = inlined_call_operand.hbm [shape: f32[16,16], index: 0, kind: input, shape index: {}]   ;;  %s365_s1 = inlined_call_operand.hbm [shape: f32[16,16], index: 1, kind: input, shape index: {}]   ;;  %s366_s2 = inlined_call_operand.hbm [shape: f32[16,16], index: 2, kind: input, shape index: {}]   ;;  %s367_s3 = inlined_call_operand.vmem [shape: f32[2,16], index: 3, kind: input, shape index: {}]   ;;  %s368_s4 = inlined_call_operand.vmem [shape: f32[2,16], index: 4, kind: input, shape index: {}]   ;;  %s369_s5 = inlined_call_operand.hbm [shape: f32[1,1], index: 5, kind: output, shape index: {}]  }
   0x1   :  { %11 = vsyncpa [#allocation7], 0 }
   0x2   :  { %12 = vsyncpa [#allocation5], 0  ;;  %s252_s18 = smov [#allocation6]   ;;  %s253_s20 = smov [#allocation3]  }
   0x3   :  { %s30_s19 = sshll.u32 %s252_s18, 4  ;;  %s18_s21 = sshll.u32 %s253_s20, 4  ;;  %s31_s19 = int_to_ptr.vmem [resolvable:$true] %s30_s19  ;;  %s289_s21 = int_to_ptr.vmem [resolvable:$true] %s18_s21 }
   0x4   :  { %s170_s24 = scalar_lea.hbm %s365_s1, 256 }
   0x5   :  { %p171_p0 = scmp.ne.s32.totalorder %s365_s1, %s170_s24  ;;  %p174_p1 = scmp.lt.u32.totalorder %s170_s24, %s365_s1 }
   0x7   :  { %p176_p2 = pnand %p174_p1, %p171_p0 }
   0x9   :  { %179 = shalt.err (!%p176_p2)
}
   0xa   :  { %s180_s29 = scalar_lea.vmem %s31_s19, 256  ;;  %p185_p4 = scmp.lt.s32.totalorder %s31_s19, %s31_s19 }
   0xb   :  { %p181_p3 = scmp.ne.s32.totalorder %s31_s19, %s180_s29  ;;  %p186_p5 = scmp.lt.s32.totalorder %s180_s29, %s180_s29 }
   0xd   :  { %p187_p6 = por %p186_p5, %p185_p4 }
   0xf   :  { %p188_p7 = pnand %p187_p6, %p181_p3 }
  0x11   :  { %191 = shalt.err (!%p188_p7)
}
  0x12   :  { %s254_s30 = smov 128   ;;  %s255_s6 = smov 8  }
  0x13   :  { %36 = dma.hbm_to_vmem [thread:$0]  %s365_s1, 256, %s31_s19, [#allocation7], %s254_s30, %s254_s30, %s255_s6  }
  0x14   :  { %s192_s11 = scalar_lea.hbm %s364_s0, 256 }
  0x15   :  { %p193_p8 = scmp.ne.s32.totalorder %s364_s0, %s192_s11  ;;  %p196_p9 = scmp.lt.u32.totalorder %s192_s11, %s364_s0 }
  0x17   :  { %p198_p10 = pnand %p196_p9, %p193_p8 }
  0x19   :  { %201 = shalt.err (!%p198_p10)
}
  0x1a   :  { %s202_s16 = scalar_lea.vmem %s289_s21, 256  ;;  %p207_p12 = scmp.lt.s32.totalorder %s289_s21, %s289_s21 }
  0x1b   :  { %p203_p11 = scmp.ne.s32.totalorder %s289_s21, %s202_s16  ;;  %p208_p13 = scmp.lt.s32.totalorder %s202_s16, %s202_s16 }
  0x1d   :  { %p209_p0 = por %p208_p13, %p207_p12 }
  0x1f   :  { %p210_p1 = pnand %p209_p0, %p203_p11 }
  0x21   :  { %213 = shalt.err (!%p210_p1)
}
  0x22   :  { %24 = dma.hbm_to_vmem [thread:$0]  %s364_s0, 256, %s289_s21, [#allocation4], %s254_s30, %s254_s30, %s255_s6  }
  0x23   :  { %s256_s18 = smov [#allocation8]   ;;  %s214_s23 = scalar_lea.hbm %s366_s2, 256 }
  0x24   :  { %s42_s19 = sshll.u32 %s256_s18, 4  ;;  %p215_p2 = scmp.ne.s32.totalorder %s366_s2, %s214_s23  ;;  %s43_s19 = int_to_ptr.vmem [resolvable:$true] %s42_s19 }
  0x25   :  { %p218_p3 = scmp.lt.u32.totalorder %s214_s23, %s366_s2 }
  0x27   :  { %p220_p4 = pnand %p218_p3, %p215_p2 }
  0x29   :  { %223 = shalt.err (!%p220_p4)
}
  0x2a   :  { %s224_s28 = scalar_lea.vmem %s43_s19, 256  ;;  %p229_p6 = scmp.lt.s32.totalorder %s43_s19, %s43_s19 }
  0x2b   :  { %p225_p5 = scmp.ne.s32.totalorder %s43_s19, %s224_s28  ;;  %p230_p7 = scmp.lt.s32.totalorder %s224_s28, %s224_s28 }
  0x2d   :  { %p231_p8 = por %p230_p7, %p229_p6 }
  0x2f   :  { %p232_p9 = pnand %p231_p8, %p225_p5 }
  0x31   :  { %235 = shalt.err (!%p232_p9)
}
  0x32   :  { %48 = dma.hbm_to_vmem [thread:$0]  %s366_s2, 256, %s43_s19, [#allocation7], %s254_s30, %s254_s30, %s255_s6  }
  0x33   :  { %246 = dma.done.wait [#allocation4], 256  }
  0x34   :  { %247 = vsyncadd [#allocation4], 4294967040 }
  0x35   :  { %248 = dma.done.wait [#allocation7], 512  }
  0x36   :  { %249 = vsyncadd [#allocation7], 4294966784  ;;  %vm66_vm0 = vcmask 130048   ;;  %v257_v0 = vmov 0.0   ;;  %v94_v1 = vld [vmem:[%s367_s3] sm:$0x3] }
  0x37   :  { %67 = vst.msk [vmem:[#allocation2] sm:$0xff] %vm66_vm0, %v257_v0  ;;  %v68_v2 = vld [vmem:[#allocation8] sm:$0xff]  ;;  %v99_v3 = vand.u32 2147483647, %v94_v1  ;;  %v69_v4 = vld [vmem:[#allocation8 + $0x8] sm:$0xff]  ;;  %v74_v9 = vld [vmem:[#allocation6] sm:$0xff] }
  0x38   :  { %v70_v5 = vld [vmem:[#allocation3] sm:$0xff]  ;;  %v71_v6 = vld [vmem:[#allocation3 + $0x8] sm:$0xff]  ;;  %v75_v10 = vld [vmem:[#allocation6 + $0x8] sm:$0xff]  ;;  %v76_v12 = vsub.f32 %v74_v9, %v68_v2  ;;  %v96_v31 = vmax.f32 %v94_v1, 0.0  ;;  %vm113_vm2 = vcmask 123904   ;;  %s236_s12 = scalar_lea.hbm %s369_s5, 16 }
  0x39   :  { %v72_v7 = vsub.f32 %v70_v5, %v68_v2  ;;  %v73_v8 = vsub.f32 %v71_v6, %v69_v4  ;;  %v100_v11 = vsub.f32 0.0, %v99_v3  ;;  %v77_v13 = vsub.f32 %v75_v10, %v69_v4  ;;  %v95_v29 = vld [vmem:[%s368_s4] sm:$0x3]  ;;  %p237_p10 = scmp.ne.s32.totalorder %s369_s5, %s236_s12  ;;  %p240_p11 = scmp.lt.u32.totalorder %s236_s12, %s369_s5 }
  0x3a   :  { %v80_v17 = vmul.f32 %v76_v12, %v76_v12  ;;  %v97_v32 = vmul.f32 %v95_v29, %v94_v1 }
  0x3b   :  { %v78_v14 = vmul.f32 %v72_v7, %v72_v7  ;;  %v79_v15 = vmul.f32 %v73_v8, %v73_v8  ;;  %v101_v16 = vmul.f32 1.442695, %v100_v11  ;;  %v81_v18 = vmul.f32 %v77_v13, %v77_v13  ;;  %p242_p12 = pnand %p240_p11, %p237_p10 }
  0x3c   :  { %v98_v36 = vsub.f32 %v96_v31, %v97_v32 }
  0x3d   :  { %166 = vpow2.f32 %v101_v16  ;;  %v82_v19 = vadd.f32 %v80_v17, %v78_v14  ;;  %v83_v20 = vadd.f32 %v81_v18, %v79_v15 }
  0x3e   :  { %v88_v23 = vld [vmem:[#allocation2] sm:$0xff] }
  0x3f   :  { %v85_v21 = vsel %vm66_vm0, %v82_v19, 0.0  ;;  %v86_v22 = vsel %vm66_vm0, %v83_v20, 0.0 }
  0x40   :  { %v87_v24 = vadd.f32 %v86_v22, %v85_v21 }
  0x42   :  { %v89_v25 = vadd.f32 %v88_v23, %v87_v24 }
  0x44   :  { %90 = vst.msk [vmem:[#allocation2] sm:$0xff] %vm66_vm0, %v89_v25 }
  0x47   :  { %v167_v26 = vpop.eup %166 }
  0x48   :  { %v103_v27 = vadd.f32 1.0, %v167_v26  ;;  %v106_v28 = vmul.f32 -0.5, %v167_v26  ;;  %v109_v33 = vand.u32 2147483647, %v167_v26 }
  0x4a   :  { %168 = vlog2.f32 %v103_v27  ;;  %v107_v30 = vadd.f32 1.0, %v106_v28  ;;  %vm110_vm1 = vcmp.lt.f32.partialorder %v109_v33, 0.0004427343 }
  0x4b   :  { %v124_v40 = vld [vmem:[#allocation2] sm:$0xff] }
  0x4c   :  { %v108_v34 = vmul.f32 %v167_v26, %v107_v30  ;;  %v125_v42 = vsel %vm66_vm0, %v124_v40, 0.0 }
  0x54   :  { %v169_v35 = vpop.eup %168 }
  0x55   :  { %v105_v37 = vmul.f32 0.6931472, %v169_v35 }
  0x57   :  { %v111_v38 = vsel %vm110_vm1, %v108_v34, %v105_v37 }
  0x58   :  { %v112_v39 = vadd.f32 %v111_v38, %v98_v36 }
  0x5a   :  { %v114_v41 = vsel %vm113_vm2, %v112_v39, 0.0 }
  0x5b   :  { %115 = vadd.xlane.f32.xlu0 %v114_v41 }
  0x5f   :  { %126 = vadd.xlane.f32.xlu0 %v125_v42 }
  0xe8   :  { %v116_v43 = vpop.xlane.xlu0 %115 }
  0xe9   :  { %v117_v44 = vrot.slane %v116_v43, 4 }
  0xeb   :  { %v118_v45 = vadd.f32 %v117_v44, %v116_v43 }
  0xec   :  { %v127_v46 = vpop.xlane.xlu0 %126 }
  0xed   :  { %v119_v47 = vrot.slane %v118_v45, 2  ;;  %v128_v48 = vrot.slane %v127_v46, 4 }
  0xef   :  { %v129_v49 = vadd.f32 %v128_v48, %v127_v46  ;;  %v120_v50 = vadd.f32 %v119_v47, %v118_v45 }
  0xf1   :  { %v130_v51 = vrot.slane %v129_v49, 2  ;;  %v121_v52 = vrot.slane %v120_v50, 1 }
  0xf3   :  { %v131_v53 = vadd.f32 %v130_v51, %v129_v49  ;;  %v122_v54 = vadd.f32 %v121_v52, %v120_v50 }
  0xf5   :  { %155 = vpush %v122_v54  ;;  %v132_v55 = vrot.slane %v131_v53, 1 }
  0xf7   :  { %v133_v56 = vadd.f32 %v132_v55, %v131_v53 }
  0xf9   :  { %157 = vpush %v133_v56 }
 0x126   :  { %s156_s4 = spop %155 }
 0x127   :  { %s136_s30 = smul.f32 0.03125, %s156_s4 }
 0x12a   :  { %s158_s6 = spop %157 }
 0x12b   :  { %s135_s8 = smul.f32 0.00390625, %s158_s6 }
 0x12d   :  { %s137_s9 = sadd.f32 %s136_s30, %s135_s8 }
 0x12f   :  { %139 = sst [smem:[#allocation9]] %s137_s9 }
 0x130   :  { %245 = shalt.err (!%p242_p12)
}
 0x131   :  { %s258_s1 = smov [#allocation9]  }
 0x132   :  { %147 = dma.smem_to_hbm %s258_s1, 16, %s369_s5, [#allocation5]  }
 0x133   :  { %250 = dma.done.wait [#allocation5], 16  }
 0x134   :  { %251 = vsyncadd [#allocation5], 4294967280 }
 0x135   :  { %151 = sfence }
 0x136   :  { %152 = vsyncpa [#allocation4], 1 }
 0x137   :  { %153 = vsyncpa [#allocation7], 1 }
 0x138   :  { %154 = vsyncpa [#allocation5], 1 }

</bundles_post_ra>
